<compile_context>
chip_gen: v7x
topology: tpu7x:2x2x1
jax: 0.10.0
libtpu: 0.0.40
codegen_flags: <defaults>
</compile_context>

<pallas_src>
import functools

import jax
import jax.numpy as jnp
from jax.experimental import pallas as pl
from jax.experimental.pallas import tpu as pltpu


def _round_up(x, m):
    return (x + m - 1) // m * m


def _tdnn_matmul_relu_stats_kernel(x_ref, w_ref, b_ref, h_ref, stats_ref, *,
                                   t_out, seq_tile):
    """One folded-context matmul tile: bias + ReLU + per-channel stats.

    x_ref:(seq_tile, CD_pad) bf16   w_ref:(CD_pad, O_pad) bf16
    b_ref:(1, O_pad) f32            h_ref:(seq_tile, O_pad) f32
    stats_ref:(2, O_pad) f32 accumulator (sum, sum-of-squares), resident
    across the seq-tile grid axis.
    """
    ti = pl.program_id(1)

    @pl.when(ti == 0)
    def _():
        stats_ref[...] = jnp.zeros_like(stats_ref)

    # Single CD-deep matmul on the MXU (bf16 operands, f32 accumulation).
    acc = jnp.dot(x_ref[...], w_ref[...], preferred_element_type=jnp.float32)
    h = jnp.maximum(acc + b_ref[...], 0.0)                      # bias + ReLU (f32)
    h_ref[...] = h.astype(h_ref.dtype)

    # Per-channel sum / sum-of-squares; mask rows padded past the true t_out
    # (padded rows pick up the bias through ReLU, so they must be excluded).
    row = ti * seq_tile + jax.lax.broadcasted_iota(jnp.int32, (seq_tile, 1), 0)
    hm = jnp.where(row < t_out, h, 0.0)
    s1 = jnp.sum(hm, axis=0, keepdims=True)                     # (1, O_pad)
    s2 = jnp.sum(hm * hm, axis=0, keepdims=True)                # (1, O_pad)
    stats_ref[...] += jnp.concatenate([s1, s2], axis=0)         # (2, O_pad)


def _bn_normalize_kernel(h_ref, scale_ref, shift_ref, o_ref):
    """Pure elementwise normalize: y = h * scale + shift (memory-bound stream)."""
    o_ref[...] = (h_ref[...] * scale_ref[...] + shift_ref[...]).astype(o_ref.dtype)


def tdnn_forward(x, w, b, gamma, beta, *, context_size, dilation,
                 batch_norm=True, eps=1e-5, seq_tile=512):
    """x: (B, seq, D) -> (B, seq - dilation*(context-1), O).

    w: (C, D, O)  == PyTorch nn.Linear weight (O, C*D) reshaped/transposed.
    """
    B, T, D = x.shape
    C, D2, O = w.shape
    assert C == context_size and D2 == D, "weight shape mismatch"
    t_out = T - dilation * (context_size - 1)
    if t_out <= 0:
        raise ValueError(
            f"seq_len={T} too short for context_size={context_size}, "
            f"dilation={dilation} (t_out={t_out})")

    CD = C * D
    CD_pad = _round_up(CD, 128)                    # lane-dense contraction axis
    O_pad = _round_up(O, 128)                      # lane-dense output channels
    ts = min(_round_up(seq_tile, 16), _round_up(t_out, 16))   # 16-row aligned
    T_pad = _round_up(t_out, ts)
    nt = T_pad // ts

    # F.unfold equivalent: fold context taps into the contraction axis.
    cols = [x[:, c * dilation:c * dilation + t_out, :] for c in range(C)]
    x_unf = jnp.concatenate(cols, axis=-1)                       # (B, t_out, C*D)
    x_unf = jnp.pad(x_unf, ((0, 0), (0, T_pad - t_out), (0, CD_pad - CD)))
    x_unf = x_unf.astype(jnp.bfloat16)                           # MXU operands bf16

    w2d = jnp.pad(w.reshape(CD, O),
                  ((0, CD_pad - CD), (0, O_pad - O))).astype(jnp.bfloat16)
    b_p = jnp.pad(jnp.asarray(b).reshape(1, O),
                  ((0, 0), (0, O_pad - O))).astype(jnp.float32)

    kernel1 = functools.partial(_tdnn_matmul_relu_stats_kernel,
                                t_out=t_out, seq_tile=ts)
    flops1 = 2 * B * T_pad * CD_pad * O_pad
    bytes1 = (B * T_pad * CD_pad * 2 + CD_pad * O_pad * 2 + O_pad * 4
              + B * T_pad * O_pad * 4 + B * 2 * O_pad * 4)

    h, stats = pl.pallas_call(
        kernel1,
        out_shape=(jax.ShapeDtypeStruct((B, T_pad, O_pad), jnp.float32),
                   jax.ShapeDtypeStruct((B, 2, O_pad), jnp.float32)),
        grid_spec=pltpu.PrefetchScalarGridSpec(
            num_scalar_prefetch=0,
            grid=(B, nt),
            in_specs=[
                pl.BlockSpec((None, ts, CD_pad), lambda bi, ti: (bi, ti, 0)),  # x
                pl.BlockSpec((CD_pad, O_pad), lambda bi, ti: (0, 0)),          # W
                pl.BlockSpec((1, O_pad), lambda bi, ti: (0, 0)),               # b
            ],
            out_specs=[
                pl.BlockSpec((None, ts, O_pad), lambda bi, ti: (bi, ti, 0)),   # h
                pl.BlockSpec((None, 2, O_pad), lambda bi, ti: (bi, 0, 0)),     # stats
            ],
        ),
        compiler_params=pltpu.CompilerParams(
            dimension_semantics=("parallel", "arbitrary"),
            vmem_limit_bytes=32 * 1024 * 1024),
        cost_estimate=pl.CostEstimate(flops=flops1, transcendentals=0,
                                      bytes_accessed=bytes1),
    )(x_unf, w2d, b_p)

    if not batch_norm:
        return h[:, :t_out, :O].astype(x.dtype)

    # Tiny per-channel stat math (O_pad-length vectors) -> fused scale / shift.
    n = B * t_out
    tot = jnp.sum(stats, axis=0)                                 # (2, O_pad)
    mean = tot[0] / n
    var = jnp.maximum(tot[1] / n - mean * mean, 0.0)             # biased variance
    g = jnp.pad(jnp.asarray(gamma).reshape(-1), (0, O_pad - O),
                constant_values=1.0).astype(jnp.float32)
    be = jnp.pad(jnp.asarray(beta).reshape(-1),
                 (0, O_pad - O)).astype(jnp.float32)
    scale = (g * jax.lax.rsqrt(var + eps)).reshape(1, O_pad)
    shift = (be - mean * scale[0]).reshape(1, O_pad)

    flops2 = 2 * B * T_pad * O_pad
    bytes2 = 2 * B * T_pad * O_pad * 4 + 2 * O_pad * 4

    y = pl.pallas_call(
        _bn_normalize_kernel,
        out_shape=jax.ShapeDtypeStruct((B, T_pad, O_pad), x.dtype),
        grid_spec=pltpu.PrefetchScalarGridSpec(
            num_scalar_prefetch=0,
            grid=(B, nt),
            in_specs=[
                pl.BlockSpec((None, ts, O_pad), lambda bi, ti: (bi, ti, 0)),
                pl.BlockSpec((1, O_pad), lambda bi, ti: (0, 0)),
                pl.BlockSpec((1, O_pad), lambda bi, ti: (0, 0)),
            ],
            out_specs=pl.BlockSpec((None, ts, O_pad), lambda bi, ti: (bi, ti, 0)),
        ),
        compiler_params=pltpu.CompilerParams(
            dimension_semantics=("parallel", "parallel"),
            vmem_limit_bytes=32 * 1024 * 1024),
        cost_estimate=pl.CostEstimate(flops=flops2, transcendentals=0,
                                      bytes_accessed=bytes2),
    )(h, scale, shift)

    return y[:, :t_out, :O]


def tdnn_reference(x, w, b, gamma, beta, *, context_size, dilation, eps=1e-5):
    """Pure-JAX (f32) reference matching the PyTorch forward (training-mode BN)."""
    B, T, D = x.shape
    C, _, O = w.shape
    t_out = T - dilation * (context_size - 1)
    cols = jnp.stack(
        [x[:, c * dilation:c * dilation + t_out, :] for c in range(context_size)],
        axis=2)                                                  # (B, t_out, C, D)
    h = jnp.einsum('btcd,cdo->bto', cols, w) + jnp.asarray(b).reshape(1, 1, O)
    h = jnp.maximum(h, 0.0)
    mean = jnp.mean(h, axis=(0, 1), keepdims=True)
    var = jnp.mean((h - mean) ** 2, axis=(0, 1), keepdims=True)
    y = (h - mean) / jnp.sqrt(var + eps)
    return y * jnp.asarray(gamma).reshape(1, 1, O) + jnp.asarray(beta).reshape(1, 1, O)


if __name__ == "__main__":
    # Small, module-consistent shapes: (batch, seq_len, input_dim)
    B, T, D = 2, 16, 16
    O = 32
    CONTEXT = 5
    DILATION = 1

    key = jax.random.PRNGKey(0)
    kx, kw, kb, kg, kbt = jax.random.split(key, 5)

    x = jax.random.normal(kx, (B, T, D), dtype=jnp.float32)
    # nn.Linear(input_dim*context, output_dim) weight, stored as (C, D, O).
    w = 0.05 * jax.random.normal(kw, (CONTEXT, D, O), dtype=jnp.float32)
    b = 0.05 * jax.random.normal(kb, (1, O), dtype=jnp.float32)
    # BatchNorm1d affine params (perturbed from the gamma=1/beta=0 default).
    gamma = 1.0 + 0.1 * jax.random.normal(kg, (O,), dtype=jnp.float32)
    beta = 0.1 * jax.random.normal(kbt, (O,), dtype=jnp.float32)

    out = tdnn_forward(x, w, b, gamma, beta,
                       context_size=CONTEXT, dilation=DILATION, batch_norm=True)
    out = jax.block_until_ready(out)

    ref = tdnn_reference(x, w, b, gamma, beta,
                         context_size=CONTEXT, dilation=DILATION)
    t_out = T - DILATION * (CONTEXT - 1)
    assert out.shape == (B, t_out, O)
    # bf16 MXU operands -> slightly looser tolerance than pure-f32 math.
    assert jnp.allclose(out, ref, rtol=2e-2, atol=2e-2), "mismatch vs reference"

    print("KERNEL_OK")
</pallas_src>

<mosaic_0001>
module attributes {stable_mosaic.version = 11 : i64} {
  func.func @_tdnn_matmul_relu_stats_kernel(%arg0: i32, %arg1: i32, %arg2: memref<1x16x128xbf16, #tpu.memory_space<vmem>>, %arg3: memref<128x128xbf16, #tpu.memory_space<vmem>>, %arg4: memref<1x128xf32, #tpu.memory_space<vmem>>, %arg5: memref<1x16x128xf32, #tpu.memory_space<vmem>>, %arg6: memref<1x2x128xf32, #tpu.memory_space<vmem>>) attributes {dimension_semantics = [#tpu.dimension_semantics<parallel>, #tpu.dimension_semantics<arbitrary>], iteration_bounds = array<i64: 2, 1>, scalar_prefetch = 0 : i64, scratch_operands = 0 : i64, tpu.core_type = #tpu.core_type<tc>, window_params = [{transform_indices = @transform_0, window_bounds = array<i64: 1, 16, 128>}, {pipeline_mode = #tpu.pipeline_mode<synchronous>, transform_indices = @transform_1, window_bounds = array<i64: 128, 128>}, {pipeline_mode = #tpu.pipeline_mode<synchronous>, transform_indices = @transform_2, window_bounds = array<i64: 1, 128>}, {transform_indices = @transform_3, window_bounds = array<i64: 1, 16, 128>}, {transform_indices = @transform_4, window_bounds = array<i64: 1, 2, 128>}]} {
    %c0_i32 = arith.constant 0 : i32
    %0 = arith.cmpi eq, %arg1, %c0_i32 : i32
    %1 = arith.extui %0 : i1 to i32
    %c0_i32_0 = arith.constant 0 : i32
    %2 = arith.cmpi ne, %1, %c0_i32_0 : i32
    scf.if %2 {
      %cst_20 = arith.constant 0.000000e+00 : f32
      %37 = vector.broadcast %cst_20 : f32 to vector<2x128xf32>
      %c0_21 = arith.constant 0 : index
      %c0_22 = arith.constant 0 : index
      %c0_23 = arith.constant 0 : index
      %38 = vector.load %arg6[%c0_21, %c0_22, %c0_23] : memref<1x2x128xf32, #tpu.memory_space<vmem>>, vector<1x2x128xf32>
      %39 = vector.shape_cast %38 : vector<1x2x128xf32> to vector<2x128xf32>
      %40 = vector.shape_cast %37 : vector<2x128xf32> to vector<1x2x128xf32>
      tpu.vector_store %arg6[%c0_21, %c0_22, %c0_23], %40 {strides = array<i32>} : memref<1x2x128xf32, #tpu.memory_space<vmem>>, vector<1x2x128xf32>,
    } else {
    }
    %c0 = arith.constant 0 : index
    %c0_1 = arith.constant 0 : index
    %c0_2 = arith.constant 0 : index
    %3 = vector.load %arg2[%c0, %c0_1, %c0_2] : memref<1x16x128xbf16, #tpu.memory_space<vmem>>, vector<1x16x128xbf16>
    %4 = vector.shape_cast %3 : vector<1x16x128xbf16> to vector<16x128xbf16>
    %c0_3 = arith.constant 0 : index
    %c0_4 = arith.constant 0 : index
    %5 = vector.load %arg3[%c0_3, %c0_4] : memref<128x128xbf16, #tpu.memory_space<vmem>>, vector<128x128xbf16>
    %cst = arith.constant dense<0.000000e+00> : vector<16x128xf32>
    %6 = tpu.matmul %4, %5, %cst {dimension_numbers = #tpu.dot_dimension_numbers<[1], [0], [0], [1], [0, 0, 1, 1], [], []>} : vector<16x128xbf16>, vector<128x128xbf16>, vector<16x128xf32> -> vector<16x128xf32>
    %c0_5 = arith.constant 0 : index
    %c0_6 = arith.constant 0 : index
    %7 = vector.load %arg4[%c0_5, %c0_6] : memref<1x128xf32, #tpu.memory_space<vmem>>, vector<1x128xf32>
    %8 = vector.broadcast %7 : vector<1x128xf32> to vector<16x128xf32>
    %9 = arith.addf %6, %8 : vector<16x128xf32>
    %cst_7 = arith.constant 0.000000e+00 : f32
    %10 = vector.broadcast %cst_7 : f32 to vector<16x128xf32>
    %11 = arith.maximumf %9, %10 : vector<16x128xf32>
    %c0_8 = arith.constant 0 : index
    %c0_9 = arith.constant 0 : index
    %c0_10 = arith.constant 0 : index
    %12 = vector.load %arg5[%c0_8, %c0_9, %c0_10] : memref<1x16x128xf32, #tpu.memory_space<vmem>>, vector<1x16x128xf32>
    %13 = vector.shape_cast %12 : vector<1x16x128xf32> to vector<16x128xf32>
    %14 = vector.shape_cast %11 : vector<16x128xf32> to vector<1x16x128xf32>
    tpu.vector_store %arg5[%c0_8, %c0_9, %c0_10], %14 {strides = array<i32>} : memref<1x16x128xf32, #tpu.memory_space<vmem>>, vector<1x16x128xf32>,
    %c16_i32 = arith.constant 16 : i32
    %15 = arith.muli %arg1, %c16_i32 : i32
    %16 = tpu.iota {dimensions = array<i32: 0>} : vector<16x1xi32>
    %17 = vector.broadcast %15 : i32 to vector<16x1xi32>
    %18 = arith.addi %17, %16 : vector<16x1xi32>
    %c12_i32 = arith.constant 12 : i32
    %19 = vector.broadcast %c12_i32 : i32 to vector<16x1xi32>
    %20 = arith.cmpi slt, %18, %19 : vector<16x1xi32>
    %cst_11 = arith.constant 0.000000e+00 : f32
    %21 = vector.shape_cast %20 : vector<16x1xi1> to vector<16x1xi1>
    %22 = vector.broadcast %21 : vector<16x1xi1> to vector<16x128xi1>
    %23 = vector.broadcast %cst_11 : f32 to vector<16x128xf32>
    %24 = arith.select %22, %11, %23 : vector<16x128xi1>, vector<16x128xf32>
    %cst_12 = arith.constant dense<0.000000e+00> : vector<128xf32>
    %25 = vector.multi_reduction <add>, %24, %cst_12 [0] : vector<16x128xf32> to vector<128xf32>
    %26 = vector.shape_cast %25 : vector<128xf32> to vector<1x128xf32>
    %27 = arith.mulf %24, %24 : vector<16x128xf32>
    %cst_13 = arith.constant dense<0.000000e+00> : vector<128xf32>
    %28 = vector.multi_reduction <add>, %27, %cst_13 [0] : vector<16x128xf32> to vector<128xf32>
    %29 = vector.shape_cast %28 : vector<128xf32> to vector<1x128xf32>
    %c0_14 = arith.constant 0 : index
    %c0_15 = arith.constant 0 : index
    %c0_16 = arith.constant 0 : index
    %30 = vector.load %arg6[%c0_14, %c0_15, %c0_16] : memref<1x2x128xf32, #tpu.memory_space<vmem>>, vector<1x2x128xf32>
    %31 = vector.shape_cast %30 : vector<1x2x128xf32> to vector<2x128xf32>
    %32 = tpu.concatenate %26, %29 in 0 : vector<1x128xf32>, vector<1x128xf32> -> vector<2x128xf32>
    %33 = arith.addf %31, %32 : vector<2x128xf32>
    %c0_17 = arith.constant 0 : index
    %c0_18 = arith.constant 0 : index
    %c0_19 = arith.constant 0 : index
    %34 = vector.load %arg6[%c0_17, %c0_18, %c0_19] : memref<1x2x128xf32, #tpu.memory_space<vmem>>, vector<1x2x128xf32>
    %35 = vector.shape_cast %34 : vector<1x2x128xf32> to vector<2x128xf32>
    %36 = vector.shape_cast %33 : vector<2x128xf32> to vector<1x2x128xf32>
    tpu.vector_store %arg6[%c0_17, %c0_18, %c0_19], %36 {strides = array<i32>} : memref<1x2x128xf32, #tpu.memory_space<vmem>>, vector<1x2x128xf32>,
    return
  }
  func.func @transform_0(%arg0: i32, %arg1: i32) -> (i32, i32, i32) {
    %c0_i32 = arith.constant 0 : i32
    %c0_i32_0 = arith.constant 0 : i32
    return %arg0, %arg1, %c0_i32 : i32, i32, i32
  }
  func.func @transform_1(%arg0: i32, %arg1: i32) -> (i32, i32) {
    %c0_i32 = arith.constant 0 : i32
    %c0_i32_0 = arith.constant 0 : i32
    %c0_i32_1 = arith.constant 0 : i32
    return %c0_i32, %c0_i32_0 : i32, i32
  }
  func.func @transform_2(%arg0: i32, %arg1: i32) -> (i32, i32) {
    %c0_i32 = arith.constant 0 : i32
    %c0_i32_0 = arith.constant 0 : i32
    %c0_i32_1 = arith.constant 0 : i32
    return %c0_i32, %c0_i32_0 : i32, i32
  }
  func.func @transform_3(%arg0: i32, %arg1: i32) -> (i32, i32, i32) {
    %c0_i32 = arith.constant 0 : i32
    %c0_i32_0 = arith.constant 0 : i32
    return %arg0, %arg1, %c0_i32 : i32, i32, i32
  }
  func.func @transform_4(%arg0: i32, %arg1: i32) -> (i32, i32, i32) {
    %c0_i32 = arith.constant 0 : i32
    %c0_i32_0 = arith.constant 0 : i32
    %c0_i32_1 = arith.constant 0 : i32
    return %arg0, %c0_i32, %c0_i32_0 : i32, i32, i32
  }
}

</mosaic_0001>

<bundles_post_ra>
// kernel: tpu_custom_call.1
= control target key start
LH: loop header
LB: loop body
LE: loop exit
PB: predicated region body
PF: predicated region fallthrough
CT: control target
= control target key end

     0   :  { %10 = vsyncpa [#allocation3], 0  ;;  %s1227_s0 = inlined_call_operand.hbm [shape: bf16[2,16,128], index: 0, kind: input, shape index: {}]   ;;  %s1228_s1 = inlined_call_operand.hbm [shape: bf16[128,128], index: 1, kind: input, shape index: {}]   ;;  %s1229_s2 = inlined_call_operand.vmem [shape: f32[1,128], index: 2, kind: input, shape index: {}]   ;;  %s1230_s3 = inlined_call_operand.hbm [shape: f32[2,16,128], index: 3, kind: output, shape index: {0}]   ;;  %s1231_s4 = inlined_call_operand.hbm [shape: f32[2,2,128], index: 4, kind: output, shape index: {1}]  }
   0x1   :  { %12 = vsyncpa [#allocation3 + $0x1], 0 }
   0x2   :  { %13 = vsyncpa [#allocation6], 0 }
   0x3   :  { %14 = vsyncpa [#allocation4], 0 }
   0x4   :  { %16 = vsyncpa [#allocation4 + $0x1], 0 }
   0x5   :  { %17 = vsyncpa [#allocation9], 0 }
   0x6   :  { %19 = vsyncpa [#allocation9 + $0x1], 0  ;;  %s958_s15 = smov 0   ;;  %s960_s16 = smov 0  }
   0x7   :  { %s962_s17 = smov 0   ;;  %s964_s18 = smov 0  }
   0x8   :  { %s966_s19 = smov 0   ;;  %s968_s20 = smov 0  }
   0x9 LB: > { %s591_s21 = sadd.s32 4294967295, %s921_s20   ;;  %s592_s22 = sadd.s32 4294967294, %s921_s20   ;;  %s921_s20 = sphi %s968_s20, %s25_s20   ;;  %s917_s19 = sphi %s966_s19, %s1255_s19   ;;  %s913_s18 = sphi %s964_s18, %s1254_s18   ;;  %s909_s17 = sphi %s962_s17, %s1253_s17   ;;  %s905_s16 = sphi %s960_s16, %s1252_s16   ;;  %s901_s15 = sphi %s958_s15, %s1251_s15  }
   0xa   : > { %p59_p0 = scmp.ne.s32.totalorder %s905_s16, %s901_s15  ;;  %p992_p1 = scmp.eq.s32.totalorder %s591_s21, 0 }
   0xb   : > { %p996_p2 = scmp.eq.s32.totalorder %s591_s21, 1  ;;  %p133_p3 = scmp.eq.s32.totalorder %s592_s22, 1 }
   0xc   : > { %s1236_s23 = scalar_select %p992_p1, 1, 0 }
   0xd   : > { %s1237_s24 = scalar_select %p996_p2, 1, 0 }
   0xe   : > { %p1002_p4 = por %p992_p1, %p59_p0  ;;  %p593_p5 = scmp.ge.s32.totalorder %s921_s20, 1 }
   0xf   : > { %p1007_p6 = por %p133_p3, %p59_p0  ;;  %p166_p7 = scmp.lt.s32.totalorder %s921_s20, 3 }
  0x10   : > { %s1238_s25 = scalar_select %p1002_p4, 1, 0 }
  0x11   : > { %s1239_s26 = scalar_select %p1007_p6, 1, 0 }
  0x12   : > { %p1012_p8 = pnand %p593_p5, %p166_p7  ;;  %s923_s28 = smov [#allocation5]  }
  0x13   : > { %s178_s29 = sshll.u32 %s923_s28, 4  ;;  %s37_s5 = sadd.s32 1, %s917_s19  ;;  %s179_s29 = int_to_ptr.vmem [resolvable:$true] %s178_s29 }
  0x14   : > { %s1240_s27 = scalar_select %p1012_p8, 1, 0 }
  0x15   : > { %p662_p9 = pneg %p1012_p8  ;;  %s745_s8 = scalar_lea.hbm %s1228_s1, 1024 }
  0x16   : > { %p746_p12 = scmp.ne.s32.totalorder %s1228_s1, %s745_s8  ;;  %p752_p5 = scmp.lt.u32.totalorder %s745_s8, %s1228_s1 }
  0x17   : > { %p1021_p11 = pnand %p662_p9, %p992_p1 }
  0x19   : > { %p747_p13 = pneg %p1021_p11 }
  0x1b   : > { %p748_p0 = pnand %p747_p13, %p746_p12 }
  0x1d   : > { %p749_p3 = pneg %p748_p0 }
  0x1f   : > { %p754_p7 = pnand %p752_p5, %p749_p3 }
  0x21   : > { %757 = shalt.err (!%p754_p7)
}
  0x22   : > { %s758_s13 = scalar_lea.vmem %s179_s29, 1024  ;;  %p766_p1 = scmp.lt.s32.totalorder %s179_s29, %s179_s29 }
  0x23   : > { %p759_p9 = scmp.ne.s32.totalorder %s179_s29, %s758_s13  ;;  %p767_p4 = scmp.lt.s32.totalorder %s758_s13, %s758_s13 }
  0x25   : > { %p761_p10 = pnand %p759_p9, %p747_p13  ;;  %p768_p8 = por %p767_p4, %p766_p1 }
  0x27   : > { %p762_p6 = pneg %p761_p10 }
  0x29   : > { %p769_p2 = pnand %p768_p8, %p762_p6 }
  0x2b   : > { %772 = shalt.err (!%p769_p2)
}
  0x2c   : > { %s924_s14 = smov 64   ;;  %s925_s21 = smov 4  }
  0x2d   : > { %665 = dma.hbm_to_vmem [thread:$0]  (!%p1021_p11), %s1228_s1, 1024, %s179_s29, [#allocation6], %s924_s14, %s924_s14, %s925_s21  }
  0x2e   : > { %p39_p1 = scmp.ge.s32.totalorder %s37_s5, 2  ;;  %s46_s6 = sadd.s32 1, %s909_s17 }
  0x2f   : > { %p53_p2 = scmp.ne.s32.totalorder %s909_s17, %s905_s16  ;;  %p54_p4 = scmp.eq.s32.totalorder %s921_s20, 0 }
  0x30   : > { %s1257_s5 = smov (%p39_p1, %s37_s5), 0  ;;  %p1243_p8 = scmp.ne.s32.totalorder %s1237_s24, 0 }
  0x31   : > { %p1051_p6 = por %p54_p4, %p53_p2  ;;  %s41_s8 = ssub.s32 %s917_s19, %s1257_s5 }
  0x32   : > { %p1057_p10 = por %p1243_p8, %p53_p2  ;;  %p678_p12 = scmp.lt.s32.totalorder %s921_s20, 2 }
  0x33   : > { %p44_p11 = scmp.eq.s32.totalorder %s41_s8, 0  ;;  %s195_s29 = sand.u32 1, %s909_s17  }
  0x34   : > { %s596_s9 = sshll.u32 %s195_s29, 3  ;;  %s621_s11 = sshll.u32 %s917_s19, 7 }
  0x35   : > { %s1066_s10 = scalar_select %p44_p11, %s909_s17, %s46_s6  }
  0x36   : > { %s1072_s22 = scalar_lea.hbm %s1227_s0, %s621_s11  ;;  %s199_s24 = scalar_lea.vmem [#allocation2], %s596_s9 }
  0x37   : > { %s208_s28 = sshll.u32 %s199_s24, 4  ;;  %p1078_p13 = pnand %p678_p12, %p1051_p6  ;;  %s1074_s28 = int_to_ptr.vmem [resolvable:$true] %s208_s28 }
  0x38   : > { %s1082_s6 = scalar_lea.sflag [#allocation3], %s195_s29  ;;  %s773_s12 = scalar_lea.hbm %s1072_s22, 128 }
  0x39   : > { %p774_p0 = scmp.ne.s32.totalorder %s1072_s22, %s773_s12  ;;  %p775_p3 = pneg %p1078_p13 }
  0x3a   : > { %s778_s7 = scalar_lea.hbm %s1227_s0, 256  ;;  %p779_p9 = scmp.lt.u32.totalorder %s1072_s22, %s1227_s0 }
  0x3b   : > { %p776_p5 = pnand %p775_p3, %p774_p0  ;;  %p780_p1 = scmp.lt.u32.totalorder %s778_s7, %s773_s12 }
  0x3c   : > { %p782_p4 = scmp.lt.u32.totalorder %s773_s12, %s1072_s22 }
  0x3d   : > { %p777_p7 = pneg %p776_p5  ;;  %p781_p2 = por %p780_p1, %p779_p9 }
  0x3f   : > { %p783_p6 = por %p782_p4, %p781_p2 }
  0x41   : > { %p784_p8 = pnand %p783_p6, %p777_p7 }
  0x43   : > { %787 = shalt.err (!%p784_p8)
}
  0x44   : > { %s788_s29 = scalar_lea.vmem %s1074_s28, 128  ;;  %s926_s9 = smov [#allocation2]  }
  0x45   : > { %p789_p12 = scmp.ne.s32.totalorder %s1074_s28, %s788_s29  ;;  %s793_s11 = sshll.u32 %s926_s9, 4  ;;  %s794_s11 = int_to_ptr.vmem [resolvable:$false] %s793_s11 }
  0x46   : > { %s795_s13 = scalar_lea.vmem %s794_s11, 256  ;;  %p796_p5 = scmp.lt.s32.totalorder %s1074_s28, %s794_s11 }
  0x47   : > { %p791_p11 = pnand %p789_p12, %p775_p3  ;;  %p797_p9 = scmp.lt.s32.totalorder %s795_s13, %s788_s29 }
  0x49   : > { %p792_p0 = pneg %p791_p11  ;;  %p798_p1 = por %p797_p9, %p796_p5 }
  0x4b   : > { %p799_p2 = pnand %p798_p1, %p792_p0 }
  0x4d   : > { %802 = shalt.err (!%p799_p2)
}
  0x4e   : > { %669 = dma.hbm_to_vmem [thread:$0]  (!%p1078_p13), %s1072_s22, 128, %s1074_s28, %s1082_s6, %s924_s14, %s924_s14, %s925_s21  }
  0x4f   : > { %p1246_p3 = scmp.ne.s32.totalorder %s1240_s27, 0 }
  0x50   : > { %s1116_s12 = sand.u32 (!%p1246_p3), 1, %s905_s16   ;;  %p1247_p7 = scmp.ne.s32.totalorder (!%p1246_p3), %s1238_s25, 0 }
  0x51   : > { %220 = sbr.rel (%p1246_p3) target bundleno = 388 (0x184), region = 32  ;;  %s600_s7 = sshll.u32 (!%p1246_p3), %s1116_s12, 3 }
  0x52   : > { %s223_s24 = scalar_lea.sflag (!%p1246_p3), [#allocation3], %s1116_s12  ;;  %s1120_s29 = scalar_lea.vmem (!%p1246_p3), [#allocation2], %s600_s7 }
  0x58   : > { %884 = dma.done.wait (%p1247_p7), %s223_s24, 128  }
  0x59   : > { %886 = vsyncadd (%p1247_p7), %s223_s24, 4294967168  ;;  %p1248_p13 = scmp.ne.s32.totalorder %s1236_s23, 0 }
  0x5b   : > { %888 = dma.done.wait (%p1248_p13), [#allocation6], 1024  }
  0x5c   : > { %890 = vsyncadd (%p1248_p13), [#allocation6], 4294966272  ;;  %v927_v0 = vmov 0.0   ;;  %vm928_vm0 = vmmov 0   ;;  %v736_v1 = vld [vmem:[#allocation5] sm:$0xff]   ;;  %v737_v2 = vld [vmem:[#allocation5 + $0x8] sm:$0xff]   ;;  %v393_v10 = vlaneseq }
  0x5d   : > { %632 = vmatprep.subr.bf16.mxu0 %v927_v0  ;;  %648 = vmatprep.mubr.msk.bf16.mxu0 %vm928_vm0, %v927_v0  ;;  %v738_v3 = vld [vmem:[#allocation5 + $0x10] sm:$0xff]   ;;  %v739_v4 = vld [vmem:[#allocation5 + $0x18] sm:$0xff]   ;;  %v740_v5 = vld [vmem:[#allocation5 + $0x20] sm:$0xff]   ;;  %s603_s23 = sshll.u32 %s1116_s12, 1  ;;  %s602_s27 = sshll.u32 %s1116_s12, 4 }
  0x5e   : > { %633 = vmatpush3.bf16.msra.mxu0 %v736_v1  ;;  %v741_v6 = vld [vmem:[#allocation5 + $0x28] sm:$0xff]   ;;  %v742_v7 = vld [vmem:[#allocation5 + $0x30] sm:$0xff]   ;;  %v743_v8 = vld [vmem:[#allocation5 + $0x38] sm:$0xff]   ;;  %s1132_s25 = scalar_lea.vmem [#allocation8], %s603_s23  ;;  %v394_v11 = vshrl.u32 %v393_v10, 7  ;;  %s252_s22 = scalar_lea.vmem [#allocation7], %s602_s27 }
  0x5f   : > { %634 = vmatprep.subr.bf16.mxu0 %v927_v0  ;;  %v744_v9 = vld [vmem:[%s1120_s29] sm:$0xff]   ;;  %267 = vst [vmem:[%s1132_s25] sm:$0x3] %v927_v0  ;;  %s449_s28 = sshll.u32 %s252_s22, 4  ;;  %s622_s8 = sshll.u32 %s913_s18, 8  ;;  %s1140_s28 = int_to_ptr.vmem [resolvable:$true] %s449_s28 }
  0x60   : > { %v604_v12 = vld [vmem:[%s1229_s2] ss:$0 sm:$0xff]  ;;  %v395_v14 = vadd.s32 8, %v394_v11  ;;  %s1145_s11 = scalar_lea.hbm %s1230_s3, %s622_s8  ;;  %s429_s13 = scalar_lea.sflag [#allocation4], %s1116_s12 }
  0x61   : > { %s803_s7 = scalar_lea.vmem %s1140_s28, 256  ;;  %s929_s24 = smov [#allocation7]  }
  0x62   : > { %635 = vmatpush3.bf16.msra.mxu0 %v737_v2  ;;  %vm400_vm1 = vcmp.lt.s32.totalorder %v395_v14, 12  ;;  %p804_p4 = scmp.ne.s32.totalorder %s1140_s28, %s803_s7  ;;  %s807_s29 = sshll.u32 %s929_s24, 4  ;;  %s808_s29 = int_to_ptr.vmem [resolvable:$false] %s807_s29 }
  0x63   : > { %636 = vmatprep.subr.bf16.mxu0 %v927_v0  ;;  %s809_s23 = scalar_lea.vmem %s808_s29, 512  ;;  %p810_p12 = scmp.lt.s32.totalorder %s1140_s28, %s808_s29 }
  0x64   : > { %p805_p6 = pnand %p804_p4, %p1057_p10  ;;  %p811_p11 = scmp.lt.s32.totalorder %s809_s23, %s803_s7 }
  0x66   : > { %637 = vmatpush3.bf16.msra.mxu0 %v738_v3  ;;  %p806_p8 = pneg %p805_p6  ;;  %p812_p0 = por %p811_p11, %p810_p12 }
  0x67   : > { %638 = vmatprep.subr.bf16.mxu0 %v927_v0 }
  0x68   : > { %p813_p5 = pnand %p812_p0, %p806_p8 }
  0x6a   : > { %639 = vmatpush3.bf16.msra.mxu0 %v739_v4 }
  0x6b   : > { %640 = vmatprep.subr.bf16.mxu0 %v927_v0 }
  0x6e   : > { %641 = vmatpush3.bf16.msra.mxu0 %v740_v5 }
  0x6f   : > { %642 = vmatprep.subr.bf16.mxu0 %v927_v0 }
  0x72   : > { %643 = vmatpush3.bf16.msra.mxu0 %v741_v6 }
  0x73   : > { %644 = vmatprep.subr.bf16.mxu0 %v927_v0 }
  0x76   : > { %645 = vmatpush3.bf16.msra.mxu0 %v742_v7 }
  0x77   : > { %646 = vmatprep.subr.bf16.mxu0 %v927_v0 }
  0x7a   : > { %647 = vmatpush3.bf16.msra.mxu0 %v743_v8 }
  0x7d   : > { %649 = vmatmul.mubr.bf16.vlgmr.msra.gmra.mrb[0].mxu0 %v744_v9 }
 0x150   : > { %v381_v13 = vpop.f32.mrb[0].mxu0 }
 0x151   : > { %v382_v15 = vadd.f32 %v604_v12, %v381_v13  ;;  %v650_v16 = vpop.f32.mrb[1].mxu0 }
 0x152   : > { %v384_v17 = vpop.f32.mrb[2].mxu0 }
 0x153   : > { %v388_v18 = vmax.f32 %v382_v15, 0.0  ;;  %v385_v19 = vadd.f32 %v604_v12, %v384_v17  ;;  %v651_v20 = vpop.f32.mrb[3].mxu0 }
 0x155   : > { %390 = vst [vmem:[%s252_s22] sm:$0xff] %v388_v18  ;;  %v389_v21 = vmax.f32 %v385_v19, 0.0  ;;  %v414_v23 = vmul.f32 %v388_v18, %v388_v18 }
 0x157   : > { %391 = vst [vmem:[%s252_s22 + $0x8] sm:$0xff] %v389_v21  ;;  %v406_v22 = vsel %vm400_vm1, %v389_v21, 0.0 }
 0x158   : > { %v407_v24 = vadd.f32 %v406_v22, %v388_v18  ;;  %v415_v25 = vmul.f32 %v406_v22, %v406_v22 }
 0x159   : > { %816 = shalt.err (!%p813_p5)
}
 0x15a   : > { %s817_s27 = scalar_lea.hbm %s1145_s11, 256  ;;  %s821_s22 = scalar_lea.hbm %s1230_s3, 512 }
 0x15b   : > { %p818_p9 = scmp.ne.s32.totalorder %s1145_s11, %s817_s27  ;;  %p822_p3 = scmp.lt.u32.totalorder %s1145_s11, %s1230_s3 }
 0x15c   : > { %p823_p7 = scmp.lt.u32.totalorder %s821_s22, %s817_s27  ;;  %p825_p4 = scmp.lt.u32.totalorder %s817_s27, %s1145_s11 }
 0x15d   : > { %p819_p1 = pnand %p818_p9, %p1057_p10 }
 0x15e   : > { %p824_p13 = por %p823_p7, %p822_p3 }
 0x15f   : > { %p820_p2 = pneg %p819_p1 }
 0x160   : > { %p826_p6 = por %p825_p4, %p824_p13 }
 0x162   : > { %p827_p8 = pnand %p826_p6, %p820_p2 }
 0x164   : > { %830 = shalt.err (!%p827_p8)
}
 0x165   : > { %s930_s9 = smov 128   ;;  %s931_s7 = smov 8   ;;  %v408_v26 = vrot.slane %v407_v24, 4  ;;  %v416_v27 = vadd.f32 %v415_v25, %v414_v23  ;;  %vm424_vm2 = vcmask 1040384   ;;  %v423_v39 = vld [vmem:[%s1132_s25] sm:$0x3] }
 0x166   : > { %658 = dma.vmem_to_hbm [thread:$0]  (%p1057_p10), %s1140_s28, 256, %s1145_s11, %s429_s13, %s930_s9, %s930_s9, %s931_s7  }
 0x167   : > { %v409_v28 = vadd.f32 %v408_v26, %v407_v24  ;;  %v417_v29 = vrot.slane %v416_v27, 4  ;;  %s618_s28 = sshll.u32 %s913_s18, 5  ;;  %s465_s11 = sshll.u32 %s1132_s25, 4  ;;  %s1179_s11 = int_to_ptr.vmem [resolvable:$true] %s465_s11 }
 0x168   : > { %s1177_s29 = scalar_lea.hbm %s1231_s4, %s618_s28  ;;  %s434_s23 = scalar_lea.sflag [#allocation9], %s1116_s12 }
 0x169   : > { %v410_v30 = vrot.slane %v409_v28, 2  ;;  %v418_v31 = vadd.f32 %v417_v29, %v416_v27  ;;  %s831_s27 = scalar_lea.vmem %s1179_s11, 32  ;;  %s932_s18 = smov [#allocation8]  }
 0x16a   : > { %p832_p12 = scmp.ne.s32.totalorder %s1179_s11, %s831_s27  ;;  %s835_s14 = sshll.u32 %s932_s18, 4  ;;  %s836_s14 = int_to_ptr.vmem [resolvable:$false] %s835_s14 }
 0x16b   : > { %v411_v32 = vadd.f32 %v410_v30, %v409_v28  ;;  %v419_v33 = vrot.slane %v418_v31, 2  ;;  %s837_s21 = scalar_lea.vmem %s836_s14, 64  ;;  %p838_p5 = scmp.lt.s32.totalorder %s1179_s11, %s836_s14 }
 0x16c   : > { %p833_p11 = pnand %p832_p12, %p1057_p10  ;;  %p839_p9 = scmp.lt.s32.totalorder %s837_s21, %s831_s27 }
 0x16d   : > { %v412_v34 = vrot.slane %v411_v32, 1  ;;  %v420_v35 = vadd.f32 %v419_v33, %v418_v31 }
 0x16e   : > { %p834_p0 = pneg %p833_p11  ;;  %p840_p1 = por %p839_p9, %p838_p5 }
 0x16f   : > { %v421_v36 = vrot.slane %v420_v35, 1  ;;  %v413_v37 = vadd.f32 %v412_v34, %v411_v32 }
 0x170   : > { %p841_p2 = pnand %p840_p1, %p834_p0 }
 0x171   : > { %v422_v38 = vadd.f32 %v421_v36, %v420_v35 }
 0x173   : > { %v425_v40 = vsel %vm424_vm2, %v413_v37, %v422_v38 }
 0x174   : > { %v426_v41 = vadd.f32 %v425_v40, %v423_v39 }
 0x176   : > { %427 = vst [vmem:[%s1132_s25] sm:$0x3] %v426_v41 }
 0x177   : > { %844 = shalt.err (!%p841_p2)
}
 0x178   : > { %s845_s12 = scalar_lea.hbm %s1177_s29, 32  ;;  %s849_s8 = scalar_lea.hbm %s1231_s4, 64 }
 0x179   : > { %p846_p3 = scmp.ne.s32.totalorder %s1177_s29, %s845_s12  ;;  %p850_p4 = scmp.lt.u32.totalorder %s1177_s29, %s1231_s4 }
 0x17a   : > { %p851_p6 = scmp.lt.u32.totalorder %s849_s8, %s845_s12  ;;  %p853_p12 = scmp.lt.u32.totalorder %s845_s12, %s1177_s29 }
 0x17b   : > { %p847_p7 = pnand %p846_p3, %p1057_p10 }
 0x17c   : > { %p852_p8 = por %p851_p6, %p850_p4 }
 0x17d   : > { %p848_p13 = pneg %p847_p7 }
 0x17e   : > { %p854_p11 = por %p853_p12, %p852_p8 }
 0x180   : > { %p855_p0 = pnand %p854_p11, %p848_p13 }
 0x182   : > { %858 = shalt.err (!%p855_p0)
}
 0x183   : > { %659 = dma.vmem_to_hbm [thread:$0]  (%p1057_p10), %s1179_s11, 32, %s1177_s29, %s434_s23  }
 0x184 PF: > { %s477_s7 = sand.u32 1, %s901_s15   ;;  %p1249_p5 = scmp.ne.s32.totalorder %s1239_s26, 0 }
 0x185   : > { %p1250_p9 = scmp.ge.s32.totalorder %s921_s20, 2  ;;  %s478_s28 = scalar_lea.sflag [#allocation4], %s477_s7 }
 0x187   : > { %p671_p1 = pnand %p1250_p9, %p1249_p5 }
 0x189   : > { %892 = dma.done.wait (!%p671_p1), %s478_s28, 256  }
 0x18a   : > { %894 = vsyncadd (!%p671_p1), %s478_s28, 4294967040  ;;  %s487_s13 = scalar_lea.sflag [#allocation9], %s477_s7 }
 0x18b   : > { %896 = dma.done.wait (!%p671_p1), %s487_s13, 32  }
 0x18c   : > { %898 = vsyncadd (!%p671_p1), %s487_s13, 4294967264  ;;  %s25_s20 = sadd.s32 1, %s921_s20   ;;  %s1251_s15 = smov %s905_s16 }
 0x18d   : > { %p22_p2 = scmp.ge.s32.totalorder %s25_s20, 4   ;;  %s1252_s16 = smov %s909_s17 }
 0x18e   : > { %s1253_s17 = smov %s1066_s10  ;;  %s1254_s18 = smov %s917_s19 }
 0x18f   : > { %s1255_s19 = smov %s1257_s5  ;;  %24 = sbr.rel (!%p22_p2) target bundleno = 9 (0x9), region = 102 }
 0x196   :  { %492 = vsyncpa [#allocation3], 1 }
 0x197   :  { %494 = vsyncpa [#allocation3 + $0x1], 1 }
 0x198   :  { %495 = vsyncpa [#allocation6], 1 }
 0x199   :  { %496 = vsyncpa [#allocation4], 1 }
 0x19a   :  { %498 = vsyncpa [#allocation4 + $0x1], 1 }
 0x19b   :  { %499 = vsyncpa [#allocation9], 1 }
 0x19c   :  { %501 = vsyncpa [#allocation9 + $0x1], 1 }

</bundles_post_ra>
